<compile_context>
chip_gen: v5e
topology: v5e:2x2
jax: 0.10.0
libtpu: 0.0.40
codegen_flags: <defaults>
</compile_context>

<pallas_src>
import jax
import jax.numpy as jnp
from jax.experimental import pallas as pl
from jax.experimental.pallas import tpu as pltpu

LANE = 128                      # vreg lane width
BF16_SUBLANE = 16               # bf16 packs 16 rows per vreg
MAX_TILE_B = 1024               # batch rows per grid step (HBM-roofline sweet spot)
SPLIT_B = 512                   # above this, force >=2 grid steps (v7x 2nd TC)
TILE_VMEM_BUDGET = 16 << 20     # bytes reserved for double-buffered x/out tiles


def _round_up(x, m):
    return (x + m - 1) // m * m


def dqn_mlp_kernel(x_ref, w1_ref, w2_ref, w3_ref, b_ref, o_ref):
    """Fused 3-layer MLP on one batch tile: (Linear+ReLU) x2 + Linear.

    Matmuls run in bf16 on the MXU with f32 accumulation; bias-add and ReLU
    stay in f32.  The final result is cast to the (bf16) output dtype only at
    the store so the padded output HBM stream is halved.
    """
    h1_w = w1_ref.shape[1]
    h2_w = w2_ref.shape[1]
    a_w = w3_ref.shape[1]

    x = x_ref[...].astype(jnp.bfloat16)   # no-op when x already arrives as bf16

    # feature layer 1: Linear + ReLU (+ Dropout == identity in eval mode)
    h1 = jnp.dot(x, w1_ref[...], preferred_element_type=jnp.float32)
    h1 = jnp.maximum(h1 + b_ref[0:1, 0:h1_w], 0.0)

    # feature layer 2: Linear + ReLU (+ Dropout == identity in eval mode)
    h2 = jnp.dot(h1.astype(jnp.bfloat16), w2_ref[...],
                 preferred_element_type=jnp.float32)
    h2 = jnp.maximum(h2 + b_ref[1:2, 0:h2_w], 0.0)

    # q_head: plain Linear, no activation
    q = jnp.dot(h2.astype(jnp.bfloat16), w3_ref[...],
                preferred_element_type=jnp.float32)
    o_ref[...] = (q + b_ref[2:3, 0:a_w]).astype(o_ref.dtype)


def prepare_params(w1, b1, w2, b2, w3, b3):
    """Pad lane dims to multiples of 128, cast weights to bf16, pack biases.

    Weights are (in, out) (transpose of PyTorch nn.Linear.weight), biases 1-D.
    Zero-padding keeps the math exact: padded x columns multiply zero weight
    rows, padded hidden lanes get zero bias and zero rows in the next layer.
    """
    def pad2(w, rows, cols):
        return jnp.pad(w, ((0, rows - w.shape[0]), (0, cols - w.shape[1])))

    s, h1 = w1.shape
    _, h2 = w2.shape
    _, a = w3.shape
    s_p = _round_up(s, LANE)
    h1_p = _round_up(h1, LANE)
    h2_p = _round_up(h2, LANE)
    a_p = _round_up(a, LANE)
    n_max = max(h1_p, h2_p, a_p)

    w1_p = pad2(w1, s_p, h1_p).astype(jnp.bfloat16)
    w2_p = pad2(w2, h1_p, h2_p).astype(jnp.bfloat16)
    w3_p = pad2(w3, h2_p, a_p).astype(jnp.bfloat16)

    def pad_b(b, n):
        b = jnp.reshape(b, (-1,))
        return jnp.pad(b, (0, n - b.shape[0]))

    biases = jnp.stack(
        [pad_b(b1, n_max), pad_b(b2, n_max), pad_b(b3, n_max)], axis=0
    ).astype(jnp.float32)  # (3, n_max), stays f32

    return dict(w1=w1_p, w2=w2_p, w3=w3_p, biases=biases,
                dims=(s, h1, h2, a), padded=(s_p, h1_p, h2_p, a_p))


def _choose_tile_b(B, s_p, a_p, x_itemsize):
    """Pick the batch tile: big (HBM-roofline), VMEM-budgeted, 16-row aligned,
    and guaranteeing >=2 grid steps for large batches (v7x megacore)."""
    per_row = 2 * (s_p * x_itemsize + a_p * 2)   # double-buffered x + bf16 out
    cap = min(MAX_TILE_B, max(BF16_SUBLANE,
                              (TILE_VMEM_BUDGET // per_row)
                              // BF16_SUBLANE * BF16_SUBLANE))
    if B > cap:
        return cap
    if B >= SPLIT_B:
        return min(cap, _round_up(pl.cdiv(B, 2), BF16_SUBLANE))
    return min(cap, _round_up(B, BF16_SUBLANE))


def _pallas_forward(x, w1, w2, w3, biases, *, tile_b, b_pad, s_p, h1_p, h2_p,
                    a_p, n_max, vmem_limit, flops, bytes_accessed,
                    single_buffer_weights):
    if single_buffer_weights:
        def res_spec(shape):
            return pl.BlockSpec(shape, lambda i: (0, 0),
                                pipeline_mode=pl.Buffered(1))
    else:
        def res_spec(shape):
            return pl.BlockSpec(shape, lambda i: (0, 0))

    return pl.pallas_call(
        dqn_mlp_kernel,
        out_shape=jax.ShapeDtypeStruct((b_pad, a_p), jnp.bfloat16),
        grid=(b_pad // tile_b,),
        in_specs=[
            pl.BlockSpec((tile_b, s_p), lambda i: (i, 0)),   # streamed x tile
            res_spec((s_p, h1_p)),                           # resident weights
            res_spec((h1_p, h2_p)),
            res_spec((h2_p, a_p)),
            res_spec((3, n_max)),                            # packed biases
        ],
        out_specs=pl.BlockSpec((tile_b, a_p), lambda i: (i, 0)),
        compiler_params=pltpu.CompilerParams(
            dimension_semantics=("parallel",),
            vmem_limit_bytes=vmem_limit),
        cost_estimate=pl.CostEstimate(flops=flops, transcendentals=0,
                                      bytes_accessed=bytes_accessed),
    )(x, w1, w2, w3, biases)


def dqn_forward(state, prepped):
    """state: (B, state_dim) f32 -> q_values: (B, action_dim) f32."""
    w1, w2, w3, biases = (prepped["w1"], prepped["w2"],
                          prepped["w3"], prepped["biases"])
    s, _, _, a = prepped["dims"]
    s_p, h1_p, h2_p, a_p = prepped["padded"]
    n_max = biases.shape[1]

    B = state.shape[0]
    tile_b = _choose_tile_b(B, s_p, a_p, 2)
    b_pad = _round_up(B, tile_b)

    # Resident-weight VMEM footprint (single-buffered) vs. this chip's VMEM.
    resident_bytes = (w1.size + w2.size + w3.size) * 2 + biases.size * 4
    try:
        vmem_cap = pltpu.get_tpu_info().vmem_capacity_bytes
    except Exception:
        vmem_cap = 64 << 20   # conservative: v7x per-TensorCore VMEM
    if resident_bytes > vmem_cap // 3:
        # TODO(synk): tile the hidden/output dims (extra grid axes + f32 VMEM
        # accumulator) instead of keeping all weights resident once hidden_dims
        # outgrow ~1/3 of VMEM (e.g. hidden>=2048 on v7x's 64 MiB VMEM).
        raise NotImplementedError(
            "hidden_dims too large for the resident-weight strategy")

    # Skip the un-hidden wrapper pad+cast pass over x when shapes are already
    # aligned; the kernel casts x -> bf16 itself.
    if b_pad == B and s_p == s:
        x = state
    else:
        x = jnp.pad(state, ((0, b_pad - B), (0, s_p - s))).astype(jnp.bfloat16)

    x_itemsize = x.dtype.itemsize
    stream_bytes = 2 * tile_b * (s_p * x_itemsize + a_p * 2)   # dbl-buffered
    act_bytes = tile_b * (h1_p + h2_p) * 4                     # f32 h1/h2
    vmem_limit = min(
        max(int(1.5 * (resident_bytes + stream_bytes + act_bytes)) + (4 << 20),
            32 << 20),
        64 << 20)

    flops = 2 * b_pad * (s_p * h1_p + h1_p * h2_p + h2_p * a_p)
    bytes_accessed = x.size * x_itemsize + b_pad * a_p * 2 + resident_bytes

    kwargs = dict(tile_b=tile_b, b_pad=b_pad, s_p=s_p, h1_p=h1_p, h2_p=h2_p,
                  a_p=a_p, n_max=n_max, vmem_limit=vmem_limit, flops=flops,
                  bytes_accessed=bytes_accessed)
    try:
        out = _pallas_forward(x, w1, w2, w3, biases,
                              single_buffer_weights=True, **kwargs)
        out = jax.block_until_ready(out)
    except Exception:
        # Backend without pipeline_mode support: fall back to default
        # (double-buffered) resident specs; numerics are identical.
        out = _pallas_forward(x, w1, w2, w3, biases,
                              single_buffer_weights=False, **kwargs)

    return out[:B, :a].astype(jnp.float32)


def init_linear_params(key, in_features, out_features):
    """Mimic torch.nn.Linear default init U[-1/sqrt(in), 1/sqrt(in)].

    Returns weight as (in, out) and bias as (out,).
    """
    kw, kb = jax.random.split(key)
    bound = 1.0 / jnp.sqrt(jnp.float32(in_features))
    w = jax.random.uniform(kw, (in_features, out_features), jnp.float32,
                           minval=-bound, maxval=bound)
    b = jax.random.uniform(kb, (out_features,), jnp.float32,
                           minval=-bound, maxval=bound)
    return w, b


if __name__ == "__main__":
    # small shapes consistent with the module's forward
    batch = 8
    state_dim = 16
    hidden_dims = [32, 32]
    action_dim = 4

    key = jax.random.PRNGKey(0)
    k_x, k1, k2, k3 = jax.random.split(key, 4)

    w1, b1 = init_linear_params(k1, state_dim, hidden_dims[0])
    w2, b2 = init_linear_params(k2, hidden_dims[0], hidden_dims[1])
    w3, b3 = init_linear_params(k3, hidden_dims[1], action_dim)
    prepped = prepare_params(w1, b1, w2, b2, w3, b3)

    state = jax.random.normal(k_x, (batch, state_dim), jnp.float32)

    q_values = jax.block_until_ready(dqn_forward(state, prepped))

    # pure-JAX reference mirroring kernel numerics (bf16 operands, f32 accum);
    # the kernel additionally rounds the final store to bf16, so compare with
    # a bf16-level tolerance.
    xb = state.astype(jnp.bfloat16)
    w1b, w2b, w3b = (w1.astype(jnp.bfloat16), w2.astype(jnp.bfloat16),
                     w3.astype(jnp.bfloat16))
    h = jnp.maximum(jnp.dot(xb, w1b, preferred_element_type=jnp.float32)
                    + b1[None, :], 0.0)
    h = jnp.maximum(jnp.dot(h.astype(jnp.bfloat16), w2b,
                            preferred_element_type=jnp.float32)
                    + b2[None, :], 0.0)
    q_ref = (jnp.dot(h.astype(jnp.bfloat16), w3b,
                     preferred_element_type=jnp.float32) + b3[None, :])

    assert q_values.shape == (batch, action_dim)
    assert jnp.allclose(q_values, q_ref, atol=2e-2, rtol=2e-2), \
        float(jnp.max(jnp.abs(q_values - q_ref)))

    print("KERNEL_OK")
</pallas_src>

<mosaic_0001>
module attributes {stable_mosaic.version = 11 : i64} {
  func.func @dqn_mlp_kernel(%arg0: i32, %arg1: memref<16x128xbf16, #tpu.memory_space<vmem>>, %arg2: memref<128x128xbf16, #tpu.memory_space<vmem>>, %arg3: memref<128x128xbf16, #tpu.memory_space<vmem>>, %arg4: memref<128x128xbf16, #tpu.memory_space<vmem>>, %arg5: memref<3x128xf32, #tpu.memory_space<vmem>>, %arg6: memref<16x128xbf16, #tpu.memory_space<vmem>>) attributes {dimension_semantics = [#tpu.dimension_semantics<parallel>], iteration_bounds = array<i64: 1>, scalar_prefetch = 0 : i64, scratch_operands = 0 : i64, tpu.core_type = #tpu.core_type<tc>, window_params = [{transform_indices = @transform_0, window_bounds = array<i64: 16, 128>}, {pipeline_mode = #tpu.pipeline_mode<synchronous>, transform_indices = @transform_1, window_bounds = array<i64: 128, 128>}, {pipeline_mode = #tpu.pipeline_mode<synchronous>, transform_indices = @transform_2, window_bounds = array<i64: 128, 128>}, {pipeline_mode = #tpu.pipeline_mode<synchronous>, transform_indices = @transform_3, window_bounds = array<i64: 128, 128>}, {pipeline_mode = #tpu.pipeline_mode<synchronous>, transform_indices = @transform_4, window_bounds = array<i64: 3, 128>}, {transform_indices = @transform_5, window_bounds = array<i64: 16, 128>}]} {
    %c0 = arith.constant 0 : index
    %c0_0 = arith.constant 0 : index
    %0 = vector.load %arg1[%c0, %c0_0] : memref<16x128xbf16, #tpu.memory_space<vmem>>, vector<16x128xbf16>
    %c0_1 = arith.constant 0 : index
    %c0_2 = arith.constant 0 : index
    %1 = vector.load %arg2[%c0_1, %c0_2] : memref<128x128xbf16, #tpu.memory_space<vmem>>, vector<128x128xbf16>
    %cst = arith.constant dense<0.000000e+00> : vector<16x128xf32>
    %2 = tpu.matmul %0, %1, %cst {dimension_numbers = #tpu.dot_dimension_numbers<[1], [0], [0], [1], [0, 0, 1, 1], [], []>} : vector<16x128xbf16>, vector<128x128xbf16>, vector<16x128xf32> -> vector<16x128xf32>
    %c0_3 = arith.constant 0 : index
    %c0_4 = arith.constant 0 : index
    %3 = vector.load %arg5[%c0_3, %c0_4] : memref<3x128xf32, #tpu.memory_space<vmem>>, vector<1x128xf32>
    %4 = vector.broadcast %3 : vector<1x128xf32> to vector<16x128xf32>
    %5 = arith.addf %2, %4 : vector<16x128xf32>
    %cst_5 = arith.constant 0.000000e+00 : f32
    %6 = vector.broadcast %cst_5 : f32 to vector<16x128xf32>
    %7 = arith.maximumf %5, %6 : vector<16x128xf32>
    %8 = arith.truncf %7 : vector<16x128xf32> to vector<16x128xbf16>
    %c0_6 = arith.constant 0 : index
    %c0_7 = arith.constant 0 : index
    %9 = vector.load %arg3[%c0_6, %c0_7] : memref<128x128xbf16, #tpu.memory_space<vmem>>, vector<128x128xbf16>
    %cst_8 = arith.constant dense<0.000000e+00> : vector<16x128xf32>
    %10 = tpu.matmul %8, %9, %cst_8 {dimension_numbers = #tpu.dot_dimension_numbers<[1], [0], [0], [1], [0, 0, 1, 1], [], []>} : vector<16x128xbf16>, vector<128x128xbf16>, vector<16x128xf32> -> vector<16x128xf32>
    %c1 = arith.constant 1 : index
    %c0_9 = arith.constant 0 : index
    %11 = vector.load %arg5[%c1, %c0_9] : memref<3x128xf32, #tpu.memory_space<vmem>>, vector<1x128xf32>
    %12 = vector.broadcast %11 : vector<1x128xf32> to vector<16x128xf32>
    %13 = arith.addf %10, %12 : vector<16x128xf32>
    %cst_10 = arith.constant 0.000000e+00 : f32
    %14 = vector.broadcast %cst_10 : f32 to vector<16x128xf32>
    %15 = arith.maximumf %13, %14 : vector<16x128xf32>
    %16 = arith.truncf %15 : vector<16x128xf32> to vector<16x128xbf16>
    %c0_11 = arith.constant 0 : index
    %c0_12 = arith.constant 0 : index
    %17 = vector.load %arg4[%c0_11, %c0_12] : memref<128x128xbf16, #tpu.memory_space<vmem>>, vector<128x128xbf16>
    %cst_13 = arith.constant dense<0.000000e+00> : vector<16x128xf32>
    %18 = tpu.matmul %16, %17, %cst_13 {dimension_numbers = #tpu.dot_dimension_numbers<[1], [0], [0], [1], [0, 0, 1, 1], [], []>} : vector<16x128xbf16>, vector<128x128xbf16>, vector<16x128xf32> -> vector<16x128xf32>
    %c2 = arith.constant 2 : index
    %c0_14 = arith.constant 0 : index
    %19 = vector.load %arg5[%c2, %c0_14] : memref<3x128xf32, #tpu.memory_space<vmem>>, vector<1x128xf32>
    %20 = vector.broadcast %19 : vector<1x128xf32> to vector<16x128xf32>
    %21 = arith.addf %18, %20 : vector<16x128xf32>
    %22 = arith.truncf %21 : vector<16x128xf32> to vector<16x128xbf16>
    %c0_15 = arith.constant 0 : index
    %c0_16 = arith.constant 0 : index
    %23 = vector.load %arg6[%c0_15, %c0_16] : memref<16x128xbf16, #tpu.memory_space<vmem>>, vector<16x128xbf16>
    tpu.vector_store %arg6[%c0_15, %c0_16], %22 {strides = array<i32>} : memref<16x128xbf16, #tpu.memory_space<vmem>>, vector<16x128xbf16>,
    return
  }
  func.func @transform_0(%arg0: i32) -> (i32, i32) {
    %c0_i32 = arith.constant 0 : i32
    %c0_i32_0 = arith.constant 0 : i32
    return %arg0, %c0_i32 : i32, i32
  }
  func.func @transform_1(%arg0: i32) -> (i32, i32) {
    %c0_i32 = arith.constant 0 : i32
    %c0_i32_0 = arith.constant 0 : i32
    %c0_i32_1 = arith.constant 0 : i32
    return %c0_i32, %c0_i32_0 : i32, i32
  }
  func.func @transform_2(%arg0: i32) -> (i32, i32) {
    %c0_i32 = arith.constant 0 : i32
    %c0_i32_0 = arith.constant 0 : i32
    %c0_i32_1 = arith.constant 0 : i32
    return %c0_i32, %c0_i32_0 : i32, i32
  }
  func.func @transform_3(%arg0: i32) -> (i32, i32) {
    %c0_i32 = arith.constant 0 : i32
    %c0_i32_0 = arith.constant 0 : i32
    %c0_i32_1 = arith.constant 0 : i32
    return %c0_i32, %c0_i32_0 : i32, i32
  }
  func.func @transform_4(%arg0: i32) -> (i32, i32) {
    %c0_i32 = arith.constant 0 : i32
    %c0_i32_0 = arith.constant 0 : i32
    %c0_i32_1 = arith.constant 0 : i32
    return %c0_i32, %c0_i32_0 : i32, i32
  }
  func.func @transform_5(%arg0: i32) -> (i32, i32) {
    %c0_i32 = arith.constant 0 : i32
    %c0_i32_0 = arith.constant 0 : i32
    return %arg0, %c0_i32 : i32, i32
  }
}

module attributes {stable_mosaic.version = 11 : i64} {
  func.func @dqn_mlp_kernel(%arg0: i32, %arg1: memref<16x128xbf16, #tpu.memory_space<vmem>>, %arg2: memref<128x128xbf16, #tpu.memory_space<vmem>>, %arg3: memref<128x128xbf16, #tpu.memory_space<vmem>>, %arg4: memref<128x128xbf16, #tpu.memory_space<vmem>>, %arg5: memref<3x128xf32, #tpu.memory_space<vmem>>, %arg6: memref<16x128xbf16, #tpu.memory_space<vmem>>) attributes {dimension_semantics = [#tpu.dimension_semantics<parallel>], iteration_bounds = array<i64: 1>, scalar_prefetch = 0 : i64, scratch_operands = 0 : i64, tpu.core_type = #tpu.core_type<tc>, window_params = [{transform_indices = @transform_0, window_bounds = array<i64: 16, 128>}, {pipeline_mode = #tpu.pipeline_mode<synchronous>, transform_indices = @transform_1, window_bounds = array<i64: 128, 128>}, {pipeline_mode = #tpu.pipeline_mode<synchronous>, transform_indices = @transform_2, window_bounds = array<i64: 128, 128>}, {pipeline_mode = #tpu.pipeline_mode<synchronous>, transform_indices = @transform_3, window_bounds = array<i64: 128, 128>}, {pipeline_mode = #tpu.pipeline_mode<synchronous>, transform_indices = @transform_4, window_bounds = array<i64: 3, 128>}, {transform_indices = @transform_5, window_bounds = array<i64: 16, 128>}]} {
    %c0 = arith.constant 0 : index
    %c0_0 = arith.constant 0 : index
    %0 = vector.load %arg1[%c0, %c0_0] : memref<16x128xbf16, #tpu.memory_space<vmem>>, vector<16x128xbf16>
    %c0_1 = arith.constant 0 : index
    %c0_2 = arith.constant 0 : index
    %1 = vector.load %arg2[%c0_1, %c0_2] : memref<128x128xbf16, #tpu.memory_space<vmem>>, vector<128x128xbf16>
    %cst = arith.constant dense<0.000000e+00> : vector<16x128xf32>
    %2 = tpu.matmul %0, %1, %cst {dimension_numbers = #tpu.dot_dimension_numbers<[1], [0], [0], [1], [0, 0, 1, 1], [], []>} : vector<16x128xbf16>, vector<128x128xbf16>, vector<16x128xf32> -> vector<16x128xf32>
    %c0_3 = arith.constant 0 : index
    %c0_4 = arith.constant 0 : index
    %3 = vector.load %arg5[%c0_3, %c0_4] : memref<3x128xf32, #tpu.memory_space<vmem>>, vector<1x128xf32>
    %4 = vector.broadcast %3 : vector<1x128xf32> to vector<16x128xf32>
    %5 = arith.addf %2, %4 : vector<16x128xf32>
    %cst_5 = arith.constant 0.000000e+00 : f32
    %6 = vector.broadcast %cst_5 : f32 to vector<16x128xf32>
    %7 = arith.maximumf %5, %6 : vector<16x128xf32>
    %8 = arith.truncf %7 : vector<16x128xf32> to vector<16x128xbf16>
    %c0_6 = arith.constant 0 : index
    %c0_7 = arith.constant 0 : index
    %9 = vector.load %arg3[%c0_6, %c0_7] : memref<128x128xbf16, #tpu.memory_space<vmem>>, vector<128x128xbf16>
    %cst_8 = arith.constant dense<0.000000e+00> : vector<16x128xf32>
    %10 = tpu.matmul %8, %9, %cst_8 {dimension_numbers = #tpu.dot_dimension_numbers<[1], [0], [0], [1], [0, 0, 1, 1], [], []>} : vector<16x128xbf16>, vector<128x128xbf16>, vector<16x128xf32> -> vector<16x128xf32>
    %c1 = arith.constant 1 : index
    %c0_9 = arith.constant 0 : index
    %11 = vector.load %arg5[%c1, %c0_9] : memref<3x128xf32, #tpu.memory_space<vmem>>, vector<1x128xf32>
    %12 = vector.broadcast %11 : vector<1x128xf32> to vector<16x128xf32>
    %13 = arith.addf %10, %12 : vector<16x128xf32>
    %cst_10 = arith.constant 0.000000e+00 : f32
    %14 = vector.broadcast %cst_10 : f32 to vector<16x128xf32>
    %15 = arith.maximumf %13, %14 : vector<16x128xf32>
    %16 = arith.truncf %15 : vector<16x128xf32> to vector<16x128xbf16>
    %c0_11 = arith.constant 0 : index
    %c0_12 = arith.constant 0 : index
    %17 = vector.load %arg4[%c0_11, %c0_12] : memref<128x128xbf16, #tpu.memory_space<vmem>>, vector<128x128xbf16>
    %cst_13 = arith.constant dense<0.000000e+00> : vector<16x128xf32>
    %18 = tpu.matmul %16, %17, %cst_13 {dimension_numbers = #tpu.dot_dimension_numbers<[1], [0], [0], [1], [0, 0, 1, 1], [], []>} : vector<16x128xbf16>, vector<128x128xbf16>, vector<16x128xf32> -> vector<16x128xf32>
    %c2 = arith.constant 2 : index
    %c0_14 = arith.constant 0 : index
    %19 = vector.load %arg5[%c2, %c0_14] : memref<3x128xf32, #tpu.memory_space<vmem>>, vector<1x128xf32>
    %20 = vector.broadcast %19 : vector<1x128xf32> to vector<16x128xf32>
    %21 = arith.addf %18, %20 : vector<16x128xf32>
    %22 = arith.truncf %21 : vector<16x128xf32> to vector<16x128xbf16>
    %c0_15 = arith.constant 0 : index
    %c0_16 = arith.constant 0 : index
    %23 = vector.load %arg6[%c0_15, %c0_16] : memref<16x128xbf16, #tpu.memory_space<vmem>>, vector<16x128xbf16>
    tpu.vector_store %arg6[%c0_15, %c0_16], %22 {strides = array<i32>} : memref<16x128xbf16, #tpu.memory_space<vmem>>, vector<16x128xbf16>,
    return
  }
  func.func @transform_0(%arg0: i32) -> (i32, i32) {
    %c0_i32 = arith.constant 0 : i32
    %c0_i32_0 = arith.constant 0 : i32
    return %arg0, %c0_i32 : i32, i32
  }
  func.func @transform_1(%arg0: i32) -> (i32, i32) {
    %c0_i32 = arith.constant 0 : i32
    %c0_i32_0 = arith.constant 0 : i32
    %c0_i32_1 = arith.constant 0 : i32
    return %c0_i32, %c0_i32_0 : i32, i32
  }
  func.func @transform_2(%arg0: i32) -> (i32, i32) {
    %c0_i32 = arith.constant 0 : i32
    %c0_i32_0 = arith.constant 0 : i32
    %c0_i32_1 = arith.constant 0 : i32
    return %c0_i32, %c0_i32_0 : i32, i32
  }
  func.func @transform_3(%arg0: i32) -> (i32, i32) {
    %c0_i32 = arith.constant 0 : i32
    %c0_i32_0 = arith.constant 0 : i32
    %c0_i32_1 = arith.constant 0 : i32
    return %c0_i32, %c0_i32_0 : i32, i32
  }
  func.func @transform_4(%arg0: i32) -> (i32, i32) {
    %c0_i32 = arith.constant 0 : i32
    %c0_i32_0 = arith.constant 0 : i32
    %c0_i32_1 = arith.constant 0 : i32
    return %c0_i32, %c0_i32_0 : i32, i32
  }
  func.func @transform_5(%arg0: i32) -> (i32, i32) {
    %c0_i32 = arith.constant 0 : i32
    %c0_i32_0 = arith.constant 0 : i32
    return %arg0, %c0_i32 : i32, i32
  }
}

</mosaic_0001>

<bundles_post_ra>
// kernel: tpu_custom_call.1
= control target key start
LH: loop header
LB: loop body
LE: loop exit
PB: predicated region body
PF: predicated region fallthrough
CT: control target
= control target key end

     0   :  { %10 = vsyncpa [#allocation3], 0  ;;  %s740_s0 = inlined_call_operand.hbm [shape: bf16[16,128], index: 0, kind: input, shape index: {}]   ;;  %s741_s1 = inlined_call_operand.hbm [shape: bf16[128,128], index: 1, kind: input, shape index: {}]   ;;  %s742_s2 = inlined_call_operand.hbm [shape: bf16[128,128], index: 2, kind: input, shape index: {}]   ;;  %s743_s3 = inlined_call_operand.hbm [shape: bf16[128,128], index: 3, kind: input, shape index: {}]   ;;  %s744_s4 = inlined_call_operand.hbm [shape: f32[3,128], index: 4, kind: input, shape index: {}]   ;;  %s745_s5 = inlined_call_operand.hbm [shape: bf16[16,128], index: 5, kind: output, shape index: {}]  }
   0x1   :  { %11 = vsyncpa [#allocation6], 0 }
   0x2   :  { %12 = vsyncpa [#allocation9], 0 }
   0x3   :  { %13 = vsyncpa [#allocation4], 0  ;;  %s31_s20 = sshll.u32 %s741_s1, 4  ;;  %s669_s21 = smov [#allocation5]   ;;  %s32_s20 = int_to_ptr.hbm [resolvable:$true] %s31_s20 }
   0x4   :  { %s33_s22 = sshll.u32 %s669_s21, 4  ;;  %s57_s25 = sshll.u32 %s743_s3, 4  ;;  %s34_s22 = int_to_ptr.vmem [resolvable:$true] %s33_s22  ;;  %s58_s25 = int_to_ptr.hbm [resolvable:$true] %s57_s25 }
   0x5   :  { %s670_s26 = smov 64   ;;  %s671_s27 = smov 4  }
   0x6   :  { %39 = dma.hbm_to_vmem [thread:$0]  %s32_s20, 1024, %s34_s22, [#allocation6], %s670_s26, %s670_s26, %s671_s27  }
   0x7   :  { %s672_s28 = smov [#allocation8]   ;;  %s18_s1 = sshll.u32 %s740_s0, 4  ;;  %s19_s1 = int_to_ptr.hbm [resolvable:$true] %s18_s1 }
   0x8   :  { %s59_s29 = sshll.u32 %s672_s28, 4  ;;  %s44_s8 = sshll.u32 %s742_s2, 4  ;;  %s60_s29 = int_to_ptr.vmem [resolvable:$true] %s59_s29  ;;  %s45_s8 = int_to_ptr.hbm [resolvable:$true] %s44_s8 }
   0x9   :  { %65 = dma.hbm_to_vmem [thread:$0]  %s58_s25, 1024, %s60_s29, [#allocation9], %s670_s26, %s670_s26, %s671_s27  }
   0xa   :  { %s673_s9 = smov [#allocation2]   ;;  %s674_s11 = smov [#allocation7]  }
   0xb   :  { %s20_s10 = sshll.u32 %s673_s9, 4  ;;  %s46_s0 = sshll.u32 %s674_s11, 4  ;;  %s21_s10 = int_to_ptr.vmem [resolvable:$true] %s20_s10  ;;  %s47_s0 = int_to_ptr.vmem [resolvable:$true] %s46_s0 }
   0xc   :  { %26 = dma.hbm_to_vmem [thread:$0]  %s19_s1, 128, %s21_s10, [#allocation3], %s670_s26, %s670_s26, %s671_s27  }
   0xd   :  { %s71_s14 = sshll.u32 %s744_s4, 4  ;;  %s675_s2 = smov [#allocation10]   ;;  %s72_s14 = int_to_ptr.hbm [resolvable:$true] %s71_s14 }
   0xe   :  { %52 = dma.hbm_to_vmem [thread:$0]  %s45_s8, 1024, %s47_s0, [#allocation6], %s670_s26, %s670_s26, %s671_s27  }
   0xf   :  { %s73_s15 = sshll.u32 %s675_s2, 4  ;;  %s74_s15 = int_to_ptr.vmem [resolvable:$true] %s73_s15 }
  0x10   :  { %76 = dma.hbm_to_vmem [thread:$0]  %s72_s14, 64, %s74_s15, [#allocation9]  }
  0x11   :  { %661 = dma.done.wait [#allocation3], 128  }
  0x12   :  { %662 = vsyncadd [#allocation3], 4294967168 }
  0x13   :  { %663 = dma.done.wait [#allocation6], 2048  }
  0x14   :  { %664 = vsyncadd [#allocation6], 4294965248 }
  0x15   :  { %665 = dma.done.wait [#allocation9], 1088  }
  0x16   :  { %666 = vsyncadd [#allocation9], 4294966208  ;;  %v484_v0 = vld [vmem:[#allocation5 + $0x38] sm:$0xff]  ;;  %v483_v1 = vld [vmem:[#allocation5 + $0x30] sm:$0xff]  ;;  %s676_s4 = smov [#allocation11]   ;;  %s361_s19 = sshll.u32 %s745_s5, 4  ;;  %s362_s19 = int_to_ptr.hbm [resolvable:$true] %s361_s19 }
  0x17   :  { %171 = vmatpush.bf16.msra.mxu0 %v484_v0  ;;  %v492_v2 = vld [vmem:[#allocation7 + $0x38] sm:$0xff]  ;;  %v491_v3 = vld [vmem:[#allocation7 + $0x30] sm:$0xff]  ;;  %v482_v4 = vld [vmem:[#allocation5 + $0x28] sm:$0xff]  ;;  %s359_s16 = sshll.u32 %s676_s4, 4  ;;  %s360_s16 = int_to_ptr.vmem [resolvable:$true] %s359_s16 }
  0x18   :  { %254 = vmatpush.bf16.msra.mxu1 %v492_v2  ;;  %v490_v5 = vld [vmem:[#allocation7 + $0x28] sm:$0xff]  ;;  %v481_v6 = vld [vmem:[#allocation5 + $0x20] sm:$0xff]  ;;  %v480_v8 = vld [vmem:[#allocation5 + $0x18] sm:$0xff] }
  0x19   :  { %v489_v7 = vld [vmem:[#allocation7 + $0x20] sm:$0xff]  ;;  %v479_v9 = vld [vmem:[#allocation5 + $0x10] sm:$0xff]  ;;  %v478_v10 = vld [vmem:[#allocation5 + $0x8] sm:$0xff] }
  0x1a   :  { %v477_v11 = vld [vmem:[#allocation5] sm:$0xff]  ;;  %v476_v12 = vld [vmem:[#allocation2] sm:$0xff]  ;;  %v487_v14 = vld [vmem:[#allocation7 + $0x10] sm:$0xff] }
  0x1b   :  { %172 = vmatpush.bf16.msra.mxu0 %v483_v1  ;;  %v488_v13 = vld [vmem:[#allocation7 + $0x18] sm:$0xff]  ;;  %v486_v15 = vld [vmem:[#allocation7 + $0x8] sm:$0xff]  ;;  %v485_v16 = vld [vmem:[#allocation7] sm:$0xff] }
  0x1c   :  { %255 = vmatpush.bf16.msra.mxu1 %v491_v3  ;;  %v500_v17 = vld [vmem:[#allocation8 + $0x38] sm:$0xff]  ;;  %v499_v18 = vld [vmem:[#allocation8 + $0x30] sm:$0xff]  ;;  %v498_v19 = vld [vmem:[#allocation8 + $0x28] sm:$0xff] }
  0x1d   :  { %337 = vmatpush.bf16.msra.mxu2 %v500_v17  ;;  %v497_v20 = vld [vmem:[#allocation8 + $0x20] sm:$0xff]  ;;  %v496_v29 = vld [vmem:[#allocation8 + $0x18] sm:$0xff]  ;;  %v495_v30 = vld [vmem:[#allocation8 + $0x10] sm:$0xff] }
  0x1e   :  { %v514_v22 = vld [vmem:[#allocation10] ss:$0 sm:$0xff]  ;;  %v494_v31 = vld [vmem:[#allocation8 + $0x8] sm:$0xff]  ;;  %v515_v34 = vld [vmem:[#allocation10 + $0x1] ss:$0 sm:$0xff] }
  0x1f   :  { %173 = vmatpush.bf16.msra.mxu0 %v482_v4  ;;  %v493_v32 = vld [vmem:[#allocation8] sm:$0xff] }
  0x20   :  { %256 = vmatpush.bf16.msra.mxu1 %v490_v5  ;;  %v516_v42 = vld [vmem:[#allocation10 + $0x2] ss:$0 sm:$0xff] }
  0x21   :  { %338 = vmatpush.bf16.msra.mxu2 %v499_v18 }
  0x23   :  { %174 = vmatpush.bf16.msra.mxu0 %v481_v6 }
  0x24   :  { %257 = vmatpush.bf16.msra.mxu1 %v489_v7 }
  0x25   :  { %339 = vmatpush.bf16.msra.mxu2 %v498_v19 }
  0x27   :  { %175 = vmatpush.bf16.msra.mxu0 %v480_v8 }
  0x28   :  { %258 = vmatpush.bf16.msra.mxu1 %v488_v13 }
  0x29   :  { %340 = vmatpush.bf16.msra.mxu2 %v497_v20 }
  0x2b   :  { %176 = vmatpush.bf16.msra.mxu0 %v479_v9 }
  0x2c   :  { %259 = vmatpush.bf16.msra.mxu1 %v487_v14 }
  0x2d   :  { %341 = vmatpush.bf16.msra.mxu2 %v496_v29 }
  0x2f   :  { %177 = vmatpush.bf16.msra.mxu0 %v478_v10 }
  0x30   :  { %260 = vmatpush.bf16.msra.mxu1 %v486_v15 }
  0x31   :  { %342 = vmatpush.bf16.msra.mxu2 %v495_v30 }
  0x33   :  { %178 = vmatpush.bf16.msra.mxu0 %v477_v11 }
  0x34   :  { %261 = vmatpush.bf16.msra.mxu1 %v485_v16 }
  0x35   :  { %343 = vmatpush.bf16.msra.mxu2 %v494_v31 }
  0x36   :  { %179 = vmatmul.bf16.vlgmr.msra.gmra.mxu0 %v476_v12 }
  0x39   :  { %344 = vmatpush.bf16.msra.mxu2 %v493_v32 }
  0xb3   :  { %v180_v21 = vpop.f32.mrf.mxu0 }
  0xb4   :  { %v181_v23 = vadd.f32 %v514_v22, %v180_v21 }
  0xb6   :  { %v185_v26 = vmax.f32 %v181_v23, 0.0 }
  0xbb   :  { %v182_v24 = vpop.f32.mrf.mxu0 }
  0xbc   :  { %v183_v25 = vadd.f32 %v514_v22, %v182_v24 }
  0xbe   :  { %v186_v27 = vmax.f32 %v183_v25, 0.0 }
  0xc0   :  { %v187_v28 = vpack.c.bf16 %v186_v27, %v185_v26 }
  0xc2   :  { %262 = vmatmul.bf16.vlgmr.msra.gmra.mxu1 %v187_v28 }
 0x13f   :  { %v263_v33 = vpop.f32.mrf.mxu1 }
 0x140   :  { %v264_v35 = vadd.f32 %v515_v34, %v263_v33 }
 0x142   :  { %v268_v38 = vmax.f32 %v264_v35, 0.0 }
 0x147   :  { %v265_v36 = vpop.f32.mrf.mxu1 }
 0x148   :  { %v266_v37 = vadd.f32 %v515_v34, %v265_v36 }
 0x14a   :  { %v269_v39 = vmax.f32 %v266_v37, 0.0 }
 0x14c   :  { %v270_v40 = vpack.c.bf16 %v269_v39, %v268_v38 }
 0x14e   :  { %345 = vmatmul.bf16.vlgmr.msra.gmra.mxu2 %v270_v40 }
 0x1d1   :  { %v346_v41 = vpop.f32.mrf.mxu2 }
 0x1d2   :  { %v347_v44 = vadd.f32 %v516_v42, %v346_v41 }
 0x1d9   :  { %v348_v43 = vpop.f32.mrf.mxu2 }
 0x1da   :  { %v349_v45 = vadd.f32 %v516_v42, %v348_v43 }
 0x1dc   :  { %v504_v46 = vpack.c.bf16 %v349_v45, %v347_v44 }
 0x1de   :  { %505 = vst [vmem:[#allocation11] sm:$0xff] %v504_v46  }
 0x1df   :  { %367 = dma.vmem_to_hbm [thread:$0]  %s360_s16, 128, %s362_s19, [#allocation4], %s670_s26, %s670_s26, %s671_s27  }
 0x1e0   :  { %667 = dma.done.wait [#allocation4], 128  }
 0x1e1   :  { %668 = vsyncadd [#allocation4], 4294967168 }
 0x1e2   :  { %372 = vsyncpa [#allocation3], 1 }
 0x1e3   :  { %373 = vsyncpa [#allocation6], 1 }
 0x1e4   :  { %374 = vsyncpa [#allocation9], 1 }
 0x1e5   :  { %375 = vsyncpa [#allocation4], 1 }

// kernel: tpu_custom_call.1
= control target key start
LH: loop header
LB: loop body
LE: loop exit
PB: predicated region body
PF: predicated region fallthrough
CT: control target
= control target key end

     0   :  { %10 = vsyncpa [#allocation3], 0  ;;  %s740_s0 = inlined_call_operand.hbm [shape: bf16[16,128], index: 0, kind: input, shape index: {}]   ;;  %s741_s1 = inlined_call_operand.hbm [shape: bf16[128,128], index: 1, kind: input, shape index: {}]   ;;  %s742_s2 = inlined_call_operand.hbm [shape: bf16[128,128], index: 2, kind: input, shape index: {}]   ;;  %s743_s3 = inlined_call_operand.hbm [shape: bf16[128,128], index: 3, kind: input, shape index: {}]   ;;  %s744_s4 = inlined_call_operand.hbm [shape: f32[3,128], index: 4, kind: input, shape index: {}]   ;;  %s745_s5 = inlined_call_operand.hbm [shape: bf16[16,128], index: 5, kind: output, shape index: {}]  }
   0x1   :  { %11 = vsyncpa [#allocation6], 0 }
   0x2   :  { %12 = vsyncpa [#allocation9], 0 }
   0x3   :  { %13 = vsyncpa [#allocation4], 0  ;;  %s31_s20 = sshll.u32 %s741_s1, 4  ;;  %s669_s21 = smov [#allocation5]   ;;  %s32_s20 = int_to_ptr.hbm [resolvable:$true] %s31_s20 }
   0x4   :  { %s33_s22 = sshll.u32 %s669_s21, 4  ;;  %s57_s25 = sshll.u32 %s743_s3, 4  ;;  %s34_s22 = int_to_ptr.vmem [resolvable:$true] %s33_s22  ;;  %s58_s25 = int_to_ptr.hbm [resolvable:$true] %s57_s25 }
   0x5   :  { %s670_s26 = smov 64   ;;  %s671_s27 = smov 4  }
   0x6   :  { %39 = dma.hbm_to_vmem [thread:$0]  %s32_s20, 1024, %s34_s22, [#allocation6], %s670_s26, %s670_s26, %s671_s27  }
   0x7   :  { %s672_s28 = smov [#allocation8]   ;;  %s18_s1 = sshll.u32 %s740_s0, 4  ;;  %s19_s1 = int_to_ptr.hbm [resolvable:$true] %s18_s1 }
   0x8   :  { %s59_s29 = sshll.u32 %s672_s28, 4  ;;  %s44_s8 = sshll.u32 %s742_s2, 4  ;;  %s60_s29 = int_to_ptr.vmem [resolvable:$true] %s59_s29  ;;  %s45_s8 = int_to_ptr.hbm [resolvable:$true] %s44_s8 }
   0x9   :  { %65 = dma.hbm_to_vmem [thread:$0]  %s58_s25, 1024, %s60_s29, [#allocation9], %s670_s26, %s670_s26, %s671_s27  }
   0xa   :  { %s673_s9 = smov [#allocation2]   ;;  %s674_s11 = smov [#allocation7]  }
   0xb   :  { %s20_s10 = sshll.u32 %s673_s9, 4  ;;  %s46_s0 = sshll.u32 %s674_s11, 4  ;;  %s21_s10 = int_to_ptr.vmem [resolvable:$true] %s20_s10  ;;  %s47_s0 = int_to_ptr.vmem [resolvable:$true] %s46_s0 }
   0xc   :  { %26 = dma.hbm_to_vmem [thread:$0]  %s19_s1, 128, %s21_s10, [#allocation3], %s670_s26, %s670_s26, %s671_s27  }
   0xd   :  { %s71_s14 = sshll.u32 %s744_s4, 4  ;;  %s675_s2 = smov [#allocation10]   ;;  %s72_s14 = int_to_ptr.hbm [resolvable:$true] %s71_s14 }
   0xe   :  { %52 = dma.hbm_to_vmem [thread:$0]  %s45_s8, 1024, %s47_s0, [#allocation6], %s670_s26, %s670_s26, %s671_s27  }
   0xf   :  { %s73_s15 = sshll.u32 %s675_s2, 4  ;;  %s74_s15 = int_to_ptr.vmem [resolvable:$true] %s73_s15 }
  0x10   :  { %76 = dma.hbm_to_vmem [thread:$0]  %s72_s14, 64, %s74_s15, [#allocation9]  }
  0x11   :  { %661 = dma.done.wait [#allocation3], 128  }
  0x12   :  { %662 = vsyncadd [#allocation3], 4294967168 }
  0x13   :  { %663 = dma.done.wait [#allocation6], 2048  }
  0x14   :  { %664 = vsyncadd [#allocation6], 4294965248 }
  0x15   :  { %665 = dma.done.wait [#allocation9], 1088  }
  0x16   :  { %666 = vsyncadd [#allocation9], 4294966208  ;;  %v484_v0 = vld [vmem:[#allocation5 + $0x38] sm:$0xff]  ;;  %v483_v1 = vld [vmem:[#allocation5 + $0x30] sm:$0xff]  ;;  %s676_s4 = smov [#allocation11]   ;;  %s361_s19 = sshll.u32 %s745_s5, 4  ;;  %s362_s19 = int_to_ptr.hbm [resolvable:$true] %s361_s19 }
  0x17   :  { %171 = vmatpush.bf16.msra.mxu0 %v484_v0  ;;  %v492_v2 = vld [vmem:[#allocation7 + $0x38] sm:$0xff]  ;;  %v491_v3 = vld [vmem:[#allocation7 + $0x30] sm:$0xff]  ;;  %v482_v4 = vld [vmem:[#allocation5 + $0x28] sm:$0xff]  ;;  %s359_s16 = sshll.u32 %s676_s4, 4  ;;  %s360_s16 = int_to_ptr.vmem [resolvable:$true] %s359_s16 }
  0x18   :  { %254 = vmatpush.bf16.msra.mxu1 %v492_v2  ;;  %v490_v5 = vld [vmem:[#allocation7 + $0x28] sm:$0xff]  ;;  %v481_v6 = vld [vmem:[#allocation5 + $0x20] sm:$0xff]  ;;  %v480_v8 = vld [vmem:[#allocation5 + $0x18] sm:$0xff] }
  0x19   :  { %v489_v7 = vld [vmem:[#allocation7 + $0x20] sm:$0xff]  ;;  %v479_v9 = vld [vmem:[#allocation5 + $0x10] sm:$0xff]  ;;  %v478_v10 = vld [vmem:[#allocation5 + $0x8] sm:$0xff] }
  0x1a   :  { %v477_v11 = vld [vmem:[#allocation5] sm:$0xff]  ;;  %v476_v12 = vld [vmem:[#allocation2] sm:$0xff]  ;;  %v487_v14 = vld [vmem:[#allocation7 + $0x10] sm:$0xff] }
  0x1b   :  { %172 = vmatpush.bf16.msra.mxu0 %v483_v1  ;;  %v488_v13 = vld [vmem:[#allocation7 + $0x18] sm:$0xff]  ;;  %v486_v15 = vld [vmem:[#allocation7 + $0x8] sm:$0xff]  ;;  %v485_v16 = vld [vmem:[#allocation7] sm:$0xff] }
  0x1c   :  { %255 = vmatpush.bf16.msra.mxu1 %v491_v3  ;;  %v500_v17 = vld [vmem:[#allocation8 + $0x38] sm:$0xff]  ;;  %v499_v18 = vld [vmem:[#allocation8 + $0x30] sm:$0xff]  ;;  %v498_v19 = vld [vmem:[#allocation8 + $0x28] sm:$0xff] }
  0x1d   :  { %337 = vmatpush.bf16.msra.mxu2 %v500_v17  ;;  %v497_v20 = vld [vmem:[#allocation8 + $0x20] sm:$0xff]  ;;  %v496_v29 = vld [vmem:[#allocation8 + $0x18] sm:$0xff]  ;;  %v495_v30 = vld [vmem:[#allocation8 + $0x10] sm:$0xff] }
  0x1e   :  { %v514_v22 = vld [vmem:[#allocation10] ss:$0 sm:$0xff]  ;;  %v494_v31 = vld [vmem:[#allocation8 + $0x8] sm:$0xff]  ;;  %v515_v34 = vld [vmem:[#allocation10 + $0x1] ss:$0 sm:$0xff] }
  0x1f   :  { %173 = vmatpush.bf16.msra.mxu0 %v482_v4  ;;  %v493_v32 = vld [vmem:[#allocation8] sm:$0xff] }
  0x20   :  { %256 = vmatpush.bf16.msra.mxu1 %v490_v5  ;;  %v516_v42 = vld [vmem:[#allocation10 + $0x2] ss:$0 sm:$0xff] }
  0x21   :  { %338 = vmatpush.bf16.msra.mxu2 %v499_v18 }
  0x23   :  { %174 = vmatpush.bf16.msra.mxu0 %v481_v6 }
  0x24   :  { %257 = vmatpush.bf16.msra.mxu1 %v489_v7 }
  0x25   :  { %339 = vmatpush.bf16.msra.mxu2 %v498_v19 }
  0x27   :  { %175 = vmatpush.bf16.msra.mxu0 %v480_v8 }
  0x28   :  { %258 = vmatpush.bf16.msra.mxu1 %v488_v13 }
  0x29   :  { %340 = vmatpush.bf16.msra.mxu2 %v497_v20 }
  0x2b   :  { %176 = vmatpush.bf16.msra.mxu0 %v479_v9 }
  0x2c   :  { %259 = vmatpush.bf16.msra.mxu1 %v487_v14 }
  0x2d   :  { %341 = vmatpush.bf16.msra.mxu2 %v496_v29 }
  0x2f   :  { %177 = vmatpush.bf16.msra.mxu0 %v478_v10 }
  0x30   :  { %260 = vmatpush.bf16.msra.mxu1 %v486_v15 }
  0x31   :  { %342 = vmatpush.bf16.msra.mxu2 %v495_v30 }
  0x33   :  { %178 = vmatpush.bf16.msra.mxu0 %v477_v11 }
  0x34   :  { %261 = vmatpush.bf16.msra.mxu1 %v485_v16 }
  0x35   :  { %343 = vmatpush.bf16.msra.mxu2 %v494_v31 }
  0x36   :  { %179 = vmatmul.bf16.vlgmr.msra.gmra.mxu0 %v476_v12 }
  0x39   :  { %344 = vmatpush.bf16.msra.mxu2 %v493_v32 }
  0xb3   :  { %v180_v21 = vpop.f32.mrf.mxu0 }
  0xb4   :  { %v181_v23 = vadd.f32 %v514_v22, %v180_v21 }
  0xb6   :  { %v185_v26 = vmax.f32 %v181_v23, 0.0 }
  0xbb   :  { %v182_v24 = vpop.f32.mrf.mxu0 }
  0xbc   :  { %v183_v25 = vadd.f32 %v514_v22, %v182_v24 }
  0xbe   :  { %v186_v27 = vmax.f32 %v183_v25, 0.0 }
  0xc0   :  { %v187_v28 = vpack.c.bf16 %v186_v27, %v185_v26 }
  0xc2   :  { %262 = vmatmul.bf16.vlgmr.msra.gmra.mxu1 %v187_v28 }
 0x13f   :  { %v263_v33 = vpop.f32.mrf.mxu1 }
 0x140   :  { %v264_v35 = vadd.f32 %v515_v34, %v263_v33 }
 0x142   :  { %v268_v38 = vmax.f32 %v264_v35, 0.0 }
 0x147   :  { %v265_v36 = vpop.f32.mrf.mxu1 }
 0x148   :  { %v266_v37 = vadd.f32 %v515_v34, %v265_v36 }
 0x14a   :  { %v269_v39 = vmax.f32 %v266_v37, 0.0 }
 0x14c   :  { %v270_v40 = vpack.c.bf16 %v269_v39, %v268_v38 }
 0x14e   :  { %345 = vmatmul.bf16.vlgmr.msra.gmra.mxu2 %v270_v40 }
 0x1d1   :  { %v346_v41 = vpop.f32.mrf.mxu2 }
 0x1d2   :  { %v347_v44 = vadd.f32 %v516_v42, %v346_v41 }
 0x1d9   :  { %v348_v43 = vpop.f32.mrf.mxu2 }
 0x1da   :  { %v349_v45 = vadd.f32 %v516_v42, %v348_v43 }
 0x1dc   :  { %v504_v46 = vpack.c.bf16 %v349_v45, %v347_v44 }
 0x1de   :  { %505 = vst [vmem:[#allocation11] sm:$0xff] %v504_v46  }
 0x1df   :  { %367 = dma.vmem_to_hbm [thread:$0]  %s360_s16, 128, %s362_s19, [#allocation4], %s670_s26, %s670_s26, %s671_s27  }
 0x1e0   :  { %667 = dma.done.wait [#allocation4], 128  }
 0x1e1   :  { %668 = vsyncadd [#allocation4], 4294967168 }
 0x1e2   :  { %372 = vsyncpa [#allocation3], 1 }
 0x1e3   :  { %373 = vsyncpa [#allocation6], 1 }
 0x1e4   :  { %374 = vsyncpa [#allocation9], 1 }
 0x1e5   :  { %375 = vsyncpa [#allocation4], 1 }

</bundles_post_ra>
